<compile_context>
chip_gen: v6e
topology: v6e:2x2x1
jax: 0.10.0
libtpu: 0.0.40
codegen_flags: <defaults>
</compile_context>

<pallas_src>
import jax
import jax.numpy as jnp
from jax.experimental import pallas as pl
from jax.experimental.pallas import tpu as pltpu


def _make_centered_kernel(inv_n: float, dtype):
    """Build the kernel with 1/N and the dtype branch baked in at trace time."""
    def kernel(x_ref, o_ref):
        x = x_ref[...]
        if dtype == jnp.float32:
            # already f32: no cast pass, sum + multiply + subtract only
            mean = jnp.sum(x) * jnp.float32(inv_n)
            o_ref[...] = x - mean
        else:
            # reduce in f32 for accuracy, subtract in the native dtype
            mean_f32 = jnp.sum(x.astype(jnp.float32)) * jnp.float32(inv_n)
            o_ref[...] = x - mean_f32.astype(dtype)
    return kernel


def centered_layer(x):
    """y = x - x.mean() (global mean), computed in a single grid-less Pallas block."""
    orig_shape = x.shape
    total = x.size

    # glue: present a lane-dense 2D slab to the kernel
    if total % 128 == 0:
        x2d = x.reshape(total // 128, 128)          # full 128-lane rows
    elif x.ndim >= 2:
        x2d = x.reshape(-1, orig_shape[-1])         # fallback (padded lanes)
    else:
        x2d = x.reshape(1, -1)
    rows, cols = x2d.shape

    kernel = _make_centered_kernel(1.0 / float(total), x.dtype)

    out = pl.pallas_call(
        kernel,
        out_shape=jax.ShapeDtypeStruct((rows, cols), x.dtype),
        # full-array, grid-less call: whole slab resident in VMEM, no per-step
        # loop bookkeeping or double buffering
        in_specs=[pl.BlockSpec(memory_space=pltpu.MemorySpace.VMEM)],
        out_specs=pl.BlockSpec(memory_space=pltpu.MemorySpace.VMEM),
    )(x2d)
    return out.reshape(orig_shape)


if __name__ == "__main__":
    key = jax.random.PRNGKey(0)
    # NCHW input, small shape consistent with the module usage
    x = jax.random.normal(key, (2, 4, 16, 16), dtype=jnp.float32)

    y = centered_layer(x)
    y = jax.block_until_ready(y)

    # correctness check vs plain JAX reference
    ref = x - jnp.mean(x)
    assert jnp.allclose(y, ref, atol=1e-5, rtol=1e-5), "mismatch vs reference"
    # centered output should have ~zero mean
    assert abs(float(jnp.mean(y))) < 1e-5

    print("KERNEL_OK")
</pallas_src>

<mosaic_0001>
module attributes {stable_mosaic.version = 11 : i64} {
  func.func @kernel(%arg0: memref<16x128xf32, #tpu.memory_space<vmem>>, %arg1: memref<16x128xf32, #tpu.memory_space<vmem>>) attributes {dimension_semantics = [], scalar_prefetch = 0 : i64, scratch_operands = 0 : i64, tpu.core_type = #tpu.core_type<tc>} {
    %c0 = arith.constant 0 : index
    %c0_0 = arith.constant 0 : index
    %0 = vector.load %arg0[%c0, %c0_0] : memref<16x128xf32, #tpu.memory_space<vmem>>, vector<16x128xf32>
    %1 = vector.shape_cast %0 : vector<16x128xf32> to vector<1x16x128xf32>
    %cst = arith.constant dense<0.000000e+00> : vector<1xf32>
    %2 = vector.multi_reduction <add>, %1, %cst [1, 2] : vector<1x16x128xf32> to vector<1xf32>
    %3 = vector.shape_cast %2 : vector<1xf32> to vector<1x1x1xf32>
    %4 = vector.extract %3[0, 0, 0] : f32 from vector<1x1x1xf32>
    %cst_1 = arith.constant 4.8828125E-4 : f32
    %5 = arith.mulf %4, %cst_1 : f32
    %6 = vector.broadcast %5 : f32 to vector<16x128xf32>
    %7 = arith.subf %0, %6 : vector<16x128xf32>
    %c0_2 = arith.constant 0 : index
    %c0_3 = arith.constant 0 : index
    %8 = vector.load %arg1[%c0_2, %c0_3] : memref<16x128xf32, #tpu.memory_space<vmem>>, vector<16x128xf32>
    tpu.vector_store %arg1[%c0_2, %c0_3], %7 {strides = array<i32>} : memref<16x128xf32, #tpu.memory_space<vmem>>, vector<16x128xf32>,
    return
  }
}

</mosaic_0001>

<bundles_post_ra>
// kernel: tpu_custom_call.1
= control target key start
LH: loop header
LB: loop body
LE: loop exit
PB: predicated region body
PF: predicated region fallthrough
CT: control target
= control target key end

     0   :  { %6 = vsyncpa [#allocation3], 0  ;;  %s134_s0 = inlined_call_operand.hbm [shape: f32[16,128], index: 0, kind: input, shape index: {}]   ;;  %s135_s1 = inlined_call_operand.hbm [shape: f32[16,128], index: 1, kind: output, shape index: {}]  }
   0x1   :  { %7 = vsyncpa [#allocation4], 0  ;;  %s108_s6 = smov [#allocation2]  }
   0x2   :  { %s13_s7 = sshll.u32 %s108_s6, 4  ;;  %s14_s7 = int_to_ptr.vmem [resolvable:$true] %s13_s7 }
   0x3   :  { %s72_s8 = scalar_lea.vmem %s14_s7, 256  ;;  %p77_p1 = scmp.lt.s32.totalorder %s14_s7, %s14_s7 }
   0x4   :  { %p73_p0 = scmp.ne.s32.totalorder %s14_s7, %s72_s8  ;;  %p78_p2 = scmp.lt.s32.totalorder %s72_s8, %s72_s8 }
   0x6   :  { %p79_p3 = por %p78_p2, %p77_p1 }
   0x8   :  { %p80_p4 = pnand %p79_p3, %p73_p0 }
   0xa   :  { %83 = shalt.err (!%p80_p4)
}
   0xb   :  { %s109_s9 = smov 128   ;;  %s110_s10 = smov 8  }
   0xc   :  { %19 = dma.hbm_to_vmem [thread:$0]  %s134_s0, 256, %s14_s7, [#allocation3], %s109_s9, %s109_s9, %s110_s10  }
   0xd   :  { %104 = dma.done.wait [#allocation3], 256  }
   0xe   :  { %105 = vsyncadd [#allocation3], 4294967040  ;;  %v23_v0 = vld [vmem:[#allocation2] sm:$0xff]  ;;  %v24_v1 = vld [vmem:[#allocation2 + $0x8] sm:$0xff]  ;;  %s111_s15 = smov [#allocation5]  }
   0xf   :  { %v25_v2 = vadd.f32 %v24_v1, %v23_v0  ;;  %s46_s16 = sshll.u32 %s111_s15, 4  ;;  %s47_s16 = int_to_ptr.vmem [resolvable:$true] %s46_s16 }
  0x10   :  { %s84_s0 = scalar_lea.vmem %s47_s16, 256  ;;  %p89_p6 = scmp.lt.s32.totalorder %s47_s16, %s47_s16 }
  0x11   :  { %26 = vadd.xlane.f32.xlu0 %v25_v2  ;;  %p85_p5 = scmp.ne.s32.totalorder %s47_s16, %s84_s0  ;;  %p90_p7 = scmp.lt.s32.totalorder %s84_s0, %s84_s0 }
  0x13   :  { %p91_p8 = por %p90_p7, %p89_p6 }
  0x15   :  { %p92_p9 = pnand %p91_p8, %p85_p5 }
  0x9a   :  { %v27_v3 = vpop.xlane.xlu0 %26 }
  0x9b   :  { %v28_v4 = vrot.slane %v27_v3, 4 }
  0x9d   :  { %v29_v5 = vadd.f32 %v28_v4, %v27_v3 }
  0x9f   :  { %v30_v6 = vrot.slane %v29_v5, 2 }
  0xa1   :  { %v31_v7 = vadd.f32 %v30_v6, %v29_v5 }
  0xa3   :  { %v32_v8 = vrot.slane %v31_v7, 1 }
  0xa5   :  { %v33_v9 = vadd.f32 %v32_v8, %v31_v7 }
  0xa7   :  { %58 = vpush %v33_v9 }
  0xd8   :  { %s59_s13 = spop %58 }
  0xd9   :  { %s35_s14 = smul.f32 0.00048828125, %s59_s13 }
  0xdb   :  { %v36_v10 = vstv %s35_s14 }
  0xdc   :  { %v37_v11 = vsub.f32 %v23_v0, %v36_v10  ;;  %v38_v12 = vsub.f32 %v24_v1, %v36_v10 }
  0xde   :  { %39 = vst [vmem:[#allocation5] sm:$0xff] %v37_v11  ;;  %40 = vst [vmem:[#allocation5 + $0x8] sm:$0xff] %v38_v12 }
  0xdf   :  { %95 = shalt.err (!%p92_p9)
}
  0xe0   :  { %52 = dma.vmem_to_hbm [thread:$0]  %s47_s16, 256, %s135_s1, [#allocation4], %s109_s9, %s109_s9, %s110_s10  }
  0xe1   :  { %106 = dma.done.wait [#allocation4], 256  }
  0xe2   :  { %107 = vsyncadd [#allocation4], 4294967040 }
  0xe3   :  { %56 = vsyncpa [#allocation3], 1 }
  0xe4   :  { %57 = vsyncpa [#allocation4], 1 }

</bundles_post_ra>
